<compile_context>
chip_gen: v7x
topology: tpu7x:2x2x1
jax: 0.10.0
libtpu: 0.0.40
codegen_flags: <defaults>
</compile_context>

<pallas_src>
import functools

import jax
import jax.numpy as jnp
from jax.experimental import pallas as pl
from jax.experimental.pallas import tpu as pltpu


def _round_up(x, m):
    return (x + m - 1) // m * m


def _chip_budget():
    """Return (vmem_budget_bytes, max_tile_m, max_tile_k) per TPU generation."""
    kind = ""
    try:
        kind = jax.devices()[0].device_kind.lower()
    except Exception:
        pass
    if "v5" in kind or "v6" in kind:
        # 128 MiB physical VMEM: big tiles amortize the ~0.35us/step pipeline
        # overhead and cut weight re-fetch when it cannot be kept resident.
        return 96 * 1024 * 1024, 2048, 1024
    # v7x (64 MiB physical, 32 MiB scoped default) and unknown chips.
    return 40 * 1024 * 1024, 1024, 512


# ---------- pass 1 (bn_act=True): conv matmul + per-tile BN partial stats ----
def _conv_stats_kernel(p_ref, w_ref, y_ref, stats_ref, acc_ref, *,
                       tile_k, weight_resident):
    # NOTE: the k==last writes below are only correct while k stays the
    # innermost grid axis (output blocks revisited across k).
    k = pl.program_id(1)

    @pl.when(k == 0)
    def _():
        acc_ref[...] = jnp.zeros_like(acc_ref)

    if weight_resident:
        # The whole (Kp, Cp) weight lives in VMEM (constant index_map); take
        # this step's K slice instead of re-DMAing a (TILE_K, Cp) tile per
        # M tile.
        start = pl.multiple_of(k * tile_k, tile_k)
        w = w_ref[pl.ds(start, tile_k), :]
    else:
        w = w_ref[...]

    # bf16 x bf16 -> f32 accumulation on the MXU.
    acc_ref[...] += jnp.dot(p_ref[...], w, preferred_element_type=jnp.float32)

    @pl.when(k == pl.num_programs(1) - 1)
    def _():
        y = acc_ref[...]                      # f32 accumulator
        y_ref[...] = y.astype(y_ref.dtype)    # bf16 intermediate writeback
        # Per-tile partial statistics from the f32 accumulator.  Zero-padded M
        # rows contribute exactly 0, so the host finalize divides by the true
        # M.  (E[y^2]-E[y]^2 in f32 is fine while |mean| is not >> std; a
        # shifted/Welford accumulation would be needed otherwise.)
        s = jnp.sum(y, axis=0, keepdims=True)         # (1, Cp)
        ss = jnp.sum(y * y, axis=0, keepdims=True)    # (1, Cp)
        row = jax.lax.broadcasted_iota(jnp.int32, (8, y.shape[1]), 0)
        stats_ref[...] = (jnp.where(row == 0, s, 0.0)
                          + jnp.where(row == 1, ss, 0.0))[None]


# ---------- pass 2 (bn_act=True): y*scale + shift, then LeakyReLU(0.1) -------
def _bn_leaky_kernel(y_ref, scale_ref, shift_ref, o_ref, *, slope):
    y = y_ref[...].astype(jnp.float32) * scale_ref[...] + shift_ref[...]
    o_ref[...] = jnp.where(y > 0, y, slope * y).astype(o_ref.dtype)


# ---------- single pass (bn_act=False): conv matmul + bias -------------------
def _conv_bias_kernel(p_ref, w_ref, b_ref, o_ref, acc_ref, *,
                      tile_k, weight_resident):
    k = pl.program_id(1)

    @pl.when(k == 0)
    def _():
        acc_ref[...] = jnp.zeros_like(acc_ref)

    if weight_resident:
        start = pl.multiple_of(k * tile_k, tile_k)
        w = w_ref[pl.ds(start, tile_k), :]
    else:
        w = w_ref[...]

    acc_ref[...] += jnp.dot(p_ref[...], w, preferred_element_type=jnp.float32)

    @pl.when(k == pl.num_programs(1) - 1)
    def _():
        o_ref[...] = (acc_ref[...] + b_ref[...]).astype(o_ref.dtype)


def cnn_block_forward(x_nchw, weight, bias, gamma, beta, *,
                      stride=1, padding=1, bn_act=True,
                      eps=1e-5, slope=0.1):
    """Pallas implementation of CNNBlock.forward (x NCHW f32, weight OIHW)."""
    N, C_in, H, W = x_nchw.shape
    C_out, C_in_w, KH, KW = weight.shape
    assert C_in == C_in_w

    H_out = (H + 2 * padding - KH) // stride + 1
    W_out = (W + 2 * padding - KW) // stride + 1
    M = N * H_out * W_out
    Kdim = KH * KW * C_in

    # --- host glue: NCHW -> NHWC (bf16), pad, im2col -> (M, K) ---------------
    # K ordering is (kh, kw, c): C_in innermost so the patch matrix minor dim
    # stays lane-dense for typical YOLO channel counts.
    # TODO(synk): extract the KH*KW patches inside the kernel (halo'd row DMA
    # from an un-expanded NHWC input via memory_space=pl.ANY) to cut activation
    # HBM traffic ~KH*KW x; the host-side im2col below is the remaining
    # dominant HBM cost for large feature maps.
    x = jnp.transpose(x_nchw, (0, 2, 3, 1)).astype(jnp.bfloat16)
    xp = jnp.pad(x, ((0, 0), (padding, padding), (padding, padding), (0, 0)))
    cols = []
    for kh in range(KH):
        for kw in range(KW):
            cols.append(xp[:,
                           kh:kh + stride * (H_out - 1) + 1:stride,
                           kw:kw + stride * (W_out - 1) + 1:stride, :])
    patches = jnp.stack(cols, axis=3)            # (N, Ho, Wo, KH*KW, C_in)
    patches = patches.reshape(M, Kdim)

    # --- per-chip tile sizing -------------------------------------------------
    budget, max_tm, max_tk = _chip_budget()
    Cp = _round_up(C_out, 128)
    Kp = _round_up(Kdim, 128)
    TILE_K = min(max_tk, Kp)
    Kp = _round_up(Kp, TILE_K)
    nk = Kp // TILE_K

    # Keep the whole weight VMEM-resident (DMA'd once per core) when small.
    w_bytes = Kp * Cp * 2
    weight_resident = w_bytes <= min(8 * 1024 * 1024, budget // 4)

    # TILE_M: multiple of 16 (bf16 sublane packing); aim for nm >= 2 so both
    # v7x TensorCores get a share of the "parallel" M axis.
    TILE_M = max(16, min(max_tm, _round_up((M + 1) // 2, 16)))

    def _vmem_use(tm):
        w = 2 * w_bytes if weight_resident else 2 * TILE_K * Cp * 2
        return (2 * tm * TILE_K * 2      # patch tile, double buffered (bf16)
                + w                      # weight
                + tm * Cp * 4            # f32 accumulator scratch
                + 2 * tm * Cp * 2        # y output, double buffered (bf16)
                + 2 * 8 * Cp * 4)        # stats output

    while _vmem_use(TILE_M) > budget and TILE_M > 16:
        TILE_M = max(16, _round_up(TILE_M // 2, 16))

    Mp = _round_up(M, TILE_M)
    nm = Mp // TILE_M

    if (Mp, Kp) != (M, Kdim):
        patches = jnp.pad(patches, ((0, Mp - M), (0, Kp - Kdim)))

    # Weight as HWIO, flattened to (K, C_out) with the same (kh, kw, c) order.
    w2 = jnp.transpose(weight, (2, 3, 1, 0)).reshape(Kdim, C_out)
    w2 = w2.astype(jnp.bfloat16)
    if (Kp, Cp) != (Kdim, C_out):
        w2 = jnp.pad(w2, ((0, Kp - Kdim), (0, Cp - C_out)))

    if weight_resident:
        w_spec = pl.BlockSpec((Kp, Cp), lambda m, k: (0, 0))
    else:
        # Fallback for very large weights: streamed (TILE_K, Cp) tiles
        # (re-fetched per M tile; acceptable only when the weight cannot fit).
        w_spec = pl.BlockSpec((TILE_K, Cp), lambda m, k: (k, 0))

    cparams = pltpu.CompilerParams(
        dimension_semantics=("parallel", "arbitrary"),   # M sharded across TCs
        vmem_limit_bytes=budget)

    if bn_act:
        y, stats = pl.pallas_call(
            functools.partial(_conv_stats_kernel, tile_k=TILE_K,
                              weight_resident=weight_resident),
            out_shape=(jax.ShapeDtypeStruct((Mp, Cp), jnp.bfloat16),
                       jax.ShapeDtypeStruct((nm, 8, Cp), jnp.float32)),
            grid_spec=pltpu.PrefetchScalarGridSpec(
                num_scalar_prefetch=0,
                grid=(nm, nk),
                in_specs=[pl.BlockSpec((TILE_M, TILE_K), lambda m, k: (m, k)),
                          w_spec],
                out_specs=[pl.BlockSpec((TILE_M, Cp), lambda m, k: (m, 0)),
                           pl.BlockSpec((1, 8, Cp), lambda m, k: (m, 0, 0))],
                scratch_shapes=[pltpu.VMEM((TILE_M, Cp), jnp.float32)]),
            compiler_params=cparams,
        )(patches, w2)

        # Finalize batch statistics (tiny host-side reduction); divide by the
        # TRUE element count M (padded rows contribute exactly 0).
        inv_m = 1.0 / float(M)
        col_sum = jnp.sum(stats[:, 0, :], axis=0)
        col_ssq = jnp.sum(stats[:, 1, :], axis=0)
        mean = col_sum * inv_m
        var = jnp.maximum(col_ssq * inv_m - mean * mean, 0.0)   # f32, clamped
        gamma_p = jnp.zeros((Cp,), jnp.float32).at[:C_out].set(
            gamma.astype(jnp.float32))
        beta_p = jnp.zeros((Cp,), jnp.float32).at[:C_out].set(
            beta.astype(jnp.float32))
        scale = gamma_p * jax.lax.rsqrt(var + eps)
        shift = beta_p - mean * scale

        out = pl.pallas_call(
            functools.partial(_bn_leaky_kernel, slope=slope),
            out_shape=jax.ShapeDtypeStruct((Mp, Cp), jnp.bfloat16),
            grid_spec=pltpu.PrefetchScalarGridSpec(
                num_scalar_prefetch=0,
                grid=(nm,),
                in_specs=[pl.BlockSpec((TILE_M, Cp), lambda m: (m, 0)),
                          pl.BlockSpec((1, Cp), lambda m: (0, 0)),
                          pl.BlockSpec((1, Cp), lambda m: (0, 0))],
                out_specs=pl.BlockSpec((TILE_M, Cp), lambda m: (m, 0))),
            compiler_params=pltpu.CompilerParams(
                dimension_semantics=("parallel",),
                vmem_limit_bytes=budget),
            input_output_aliases={0: 0},    # overwrite y in place (same HBM buf)
        )(y, scale.reshape(1, Cp), shift.reshape(1, Cp))
    else:
        bias_p = jnp.zeros((1, Cp), jnp.float32).at[0, :C_out].set(
            bias.astype(jnp.float32))
        out = pl.pallas_call(
            functools.partial(_conv_bias_kernel, tile_k=TILE_K,
                              weight_resident=weight_resident),
            out_shape=jax.ShapeDtypeStruct((Mp, Cp), jnp.float32),
            grid_spec=pltpu.PrefetchScalarGridSpec(
                num_scalar_prefetch=0,
                grid=(nm, nk),
                in_specs=[pl.BlockSpec((TILE_M, TILE_K), lambda m, k: (m, k)),
                          w_spec,
                          pl.BlockSpec((1, Cp), lambda m, k: (0, 0))],
                out_specs=pl.BlockSpec((TILE_M, Cp), lambda m, k: (m, 0)),
                scratch_shapes=[pltpu.VMEM((TILE_M, Cp), jnp.float32)]),
            compiler_params=cparams,
        )(patches, w2, bias_p)

    out = out[:M, :C_out].reshape(N, H_out, W_out, C_out)
    # TODO(synk): when chaining CNNBlocks, return this NHWC bf16 tensor
    # directly (skip the NCHW transpose + f32 cast, which is a full relayout).
    return jnp.transpose(out, (0, 3, 1, 2)).astype(jnp.float32)


def _reference(x, weight, bias, gamma, beta, *, stride, padding, bn_act,
               eps=1e-5, slope=0.1):
    # Reference conv is also fed bf16 operands (f32 accumulation) so the
    # comparison is apples-to-apples with the bf16 MXU kernel.
    y = jax.lax.conv_general_dilated(
        x.astype(jnp.bfloat16), weight.astype(jnp.bfloat16),
        (stride, stride), [(padding, padding), (padding, padding)],
        dimension_numbers=("NCHW", "OIHW", "NCHW"),
        preferred_element_type=jnp.float32)
    if bn_act:
        mean = jnp.mean(y, axis=(0, 2, 3), keepdims=True)
        var = jnp.mean((y - mean) ** 2, axis=(0, 2, 3), keepdims=True)
        y = (y - mean) * jax.lax.rsqrt(var + eps)
        y = y * gamma.reshape(1, -1, 1, 1) + beta.reshape(1, -1, 1, 1)
        y = jnp.where(y > 0, y, slope * y)
    else:
        y = y + bias.reshape(1, -1, 1, 1)
    return y


if __name__ == "__main__":
    key = jax.random.PRNGKey(0)
    k_x, k_w, k_b, k_g, k_be = jax.random.split(key, 5)

    # Small shapes consistent with CNNBlock(in=4, out=8, kernel=3, s=1, p=1)
    N, C_in, H, W = 2, 4, 16, 16
    C_out, KH, KW = 8, 3, 3

    x = jax.random.normal(k_x, (N, C_in, H, W), jnp.float32)
    weight = 0.1 * jax.random.normal(k_w, (C_out, C_in, KH, KW), jnp.float32)
    bias = 0.1 * jax.random.normal(k_b, (C_out,), jnp.float32)
    gamma = 1.0 + 0.1 * jax.random.normal(k_g, (C_out,), jnp.float32)
    beta = 0.1 * jax.random.normal(k_be, (C_out,), jnp.float32)

    # bn_act=True path (conv -> BN (batch stats) -> LeakyReLU).  The conv
    # intermediate and the final activation are stored in bf16, so allow a
    # bf16-sized tolerance.
    out = cnn_block_forward(x, weight, bias, gamma, beta,
                            stride=1, padding=1, bn_act=True)
    out = jax.block_until_ready(out)
    ref = _reference(x, weight, bias, gamma, beta,
                     stride=1, padding=1, bn_act=True)
    assert out.shape == (N, C_out, H, W)
    assert jnp.allclose(out, ref, atol=1e-2, rtol=1e-2)

    # bn_act=False path (conv + bias only, f32 output)
    out2 = cnn_block_forward(x, weight, bias, gamma, beta,
                             stride=1, padding=1, bn_act=False)
    out2 = jax.block_until_ready(out2)
    ref2 = _reference(x, weight, bias, gamma, beta,
                      stride=1, padding=1, bn_act=False)
    assert jnp.allclose(out2, ref2, atol=5e-3, rtol=5e-3)

    print("KERNEL_OK")
</pallas_src>

<mosaic_0001>
module attributes {stable_mosaic.version = 11 : i64} {
  func.func @_conv_stats_kernel(%arg0: i32, %arg1: i32, %arg2: memref<256x128xbf16, #tpu.memory_space<vmem>>, %arg3: memref<128x128xbf16, #tpu.memory_space<vmem>>, %arg4: memref<256x128xbf16, #tpu.memory_space<vmem>>, %arg5: memref<1x8x128xf32, #tpu.memory_space<vmem>>, %arg6: memref<256x128xf32, #tpu.memory_space<vmem>>) attributes {dimension_semantics = [#tpu.dimension_semantics<parallel>, #tpu.dimension_semantics<arbitrary>], iteration_bounds = array<i64: 2, 1>, scalar_prefetch = 0 : i64, scratch_operands = 1 : i64, tpu.core_type = #tpu.core_type<tc>, window_params = [{transform_indices = @transform_0, window_bounds = array<i64: 256, 128>}, {pipeline_mode = #tpu.pipeline_mode<synchronous>, transform_indices = @transform_1, window_bounds = array<i64: 128, 128>}, {transform_indices = @transform_2, window_bounds = array<i64: 256, 128>}, {transform_indices = @transform_3, window_bounds = array<i64: 1, 8, 128>}]} {
    %c0_i32 = arith.constant 0 : i32
    %0 = arith.cmpi eq, %arg1, %c0_i32 : i32
    %1 = arith.extui %0 : i1 to i32
    %c0_i32_0 = arith.constant 0 : i32
    %2 = arith.cmpi ne, %1, %c0_i32_0 : i32
    scf.if %2 {
      %cst_9 = arith.constant 0.000000e+00 : f32
      %15 = vector.broadcast %cst_9 : f32 to vector<256x128xf32>
      %c0_10 = arith.constant 0 : index
      %c0_11 = arith.constant 0 : index
      %16 = vector.load %arg6[%c0_10, %c0_11] : memref<256x128xf32, #tpu.memory_space<vmem>>, vector<256x128xf32>
      tpu.vector_store %arg6[%c0_10, %c0_11], %15 {strides = array<i32>} : memref<256x128xf32, #tpu.memory_space<vmem>>, vector<256x128xf32>,
    } else {
    }
    %c128_i32 = arith.constant 128 : i32
    %3 = arith.muli %arg1, %c128_i32 : i32
    %4 = tpu.assume_multiple %3, 128 : i32
    %5 = arith.index_cast %4 : i32 to index
    %c0 = arith.constant 0 : index
    %6 = vector.load %arg3[%5, %c0] : memref<128x128xbf16, #tpu.memory_space<vmem>>, vector<128x128xbf16>
    %c0_1 = arith.constant 0 : index
    %c0_2 = arith.constant 0 : index
    %7 = vector.load %arg6[%c0_1, %c0_2] : memref<256x128xf32, #tpu.memory_space<vmem>>, vector<256x128xf32>
    %c0_3 = arith.constant 0 : index
    %c0_4 = arith.constant 0 : index
    %8 = vector.load %arg2[%c0_3, %c0_4] : memref<256x128xbf16, #tpu.memory_space<vmem>>, vector<256x128xbf16>
    %cst = arith.constant dense<0.000000e+00> : vector<256x128xf32>
    %9 = tpu.matmul %8, %6, %cst {dimension_numbers = #tpu.dot_dimension_numbers<[1], [0], [0], [1], [0, 0, 1, 1], [], []>} : vector<256x128xbf16>, vector<128x128xbf16>, vector<256x128xf32> -> vector<256x128xf32>
    %10 = arith.addf %7, %9 : vector<256x128xf32>
    %c0_5 = arith.constant 0 : index
    %c0_6 = arith.constant 0 : index
    %11 = vector.load %arg6[%c0_5, %c0_6] : memref<256x128xf32, #tpu.memory_space<vmem>>, vector<256x128xf32>
    tpu.vector_store %arg6[%c0_5, %c0_6], %10 {strides = array<i32>} : memref<256x128xf32, #tpu.memory_space<vmem>>, vector<256x128xf32>,
    %c0_i32_7 = arith.constant 0 : i32
    %12 = arith.cmpi eq, %arg1, %c0_i32_7 : i32
    %13 = arith.extui %12 : i1 to i32
    %c0_i32_8 = arith.constant 0 : i32
    %14 = arith.cmpi ne, %13, %c0_i32_8 : i32
    scf.if %14 {
      %c0_9 = arith.constant 0 : index
      %c0_10 = arith.constant 0 : index
      %15 = vector.load %arg6[%c0_9, %c0_10] : memref<256x128xf32, #tpu.memory_space<vmem>>, vector<256x128xf32>
      %16 = arith.truncf %15 : vector<256x128xf32> to vector<256x128xbf16>
      %c0_11 = arith.constant 0 : index
      %c0_12 = arith.constant 0 : index
      %17 = vector.load %arg4[%c0_11, %c0_12] : memref<256x128xbf16, #tpu.memory_space<vmem>>, vector<256x128xbf16>
      tpu.vector_store %arg4[%c0_11, %c0_12], %16 {strides = array<i32>} : memref<256x128xbf16, #tpu.memory_space<vmem>>, vector<256x128xbf16>,
      %cst_13 = arith.constant dense<0.000000e+00> : vector<128xf32>
      %18 = vector.multi_reduction <add>, %15, %cst_13 [0] : vector<256x128xf32> to vector<128xf32>
      %19 = vector.shape_cast %18 : vector<128xf32> to vector<1x128xf32>
      %20 = arith.mulf %15, %15 : vector<256x128xf32>
      %cst_14 = arith.constant dense<0.000000e+00> : vector<128xf32>
      %21 = vector.multi_reduction <add>, %20, %cst_14 [0] : vector<256x128xf32> to vector<128xf32>
      %22 = vector.shape_cast %21 : vector<128xf32> to vector<1x128xf32>
      %23 = tpu.iota {dimensions = array<i32: 0>} : vector<8x128xi32>
      %c0_i32_15 = arith.constant 0 : i32
      %24 = vector.broadcast %c0_i32_15 : i32 to vector<8x128xi32>
      %25 = arith.cmpi eq, %23, %24 : vector<8x128xi32>
      %cst_16 = arith.constant 0.000000e+00 : f32
      %26 = vector.shape_cast %19 : vector<1x128xf32> to vector<1x128xf32>
      %27 = vector.broadcast %26 : vector<1x128xf32> to vector<8x128xf32>
      %28 = vector.broadcast %cst_16 : f32 to vector<8x128xf32>
      %29 = arith.select %25, %27, %28 : vector<8x128xi1>, vector<8x128xf32>
      %c1_i32 = arith.constant 1 : i32
      %30 = vector.broadcast %c1_i32 : i32 to vector<8x128xi32>
      %31 = arith.cmpi eq, %23, %30 : vector<8x128xi32>
      %cst_17 = arith.constant 0.000000e+00 : f32
      %32 = vector.shape_cast %22 : vector<1x128xf32> to vector<1x128xf32>
      %33 = vector.broadcast %32 : vector<1x128xf32> to vector<8x128xf32>
      %34 = vector.broadcast %cst_17 : f32 to vector<8x128xf32>
      %35 = arith.select %31, %33, %34 : vector<8x128xi1>, vector<8x128xf32>
      %36 = arith.addf %29, %35 : vector<8x128xf32>
      %37 = vector.shape_cast %36 : vector<8x128xf32> to vector<1x8x128xf32>
      %c0_18 = arith.constant 0 : index
      %c0_19 = arith.constant 0 : index
      %c0_20 = arith.constant 0 : index
      %38 = vector.load %arg5[%c0_18, %c0_19, %c0_20] : memref<1x8x128xf32, #tpu.memory_space<vmem>>, vector<1x8x128xf32>
      tpu.vector_store %arg5[%c0_18, %c0_19, %c0_20], %37 {strides = array<i32>} : memref<1x8x128xf32, #tpu.memory_space<vmem>>, vector<1x8x128xf32>,
    } else {
    }
    return
  }
  func.func @transform_0(%arg0: i32, %arg1: i32) -> (i32, i32) {
    %c0_i32 = arith.constant 0 : i32
    return %arg0, %arg1 : i32, i32
  }
  func.func @transform_1(%arg0: i32, %arg1: i32) -> (i32, i32) {
    %c0_i32 = arith.constant 0 : i32
    %c0_i32_0 = arith.constant 0 : i32
    %c0_i32_1 = arith.constant 0 : i32
    return %c0_i32, %c0_i32_0 : i32, i32
  }
  func.func @transform_2(%arg0: i32, %arg1: i32) -> (i32, i32) {
    %c0_i32 = arith.constant 0 : i32
    %c0_i32_0 = arith.constant 0 : i32
    return %arg0, %c0_i32 : i32, i32
  }
  func.func @transform_3(%arg0: i32, %arg1: i32) -> (i32, i32, i32) {
    %c0_i32 = arith.constant 0 : i32
    %c0_i32_0 = arith.constant 0 : i32
    %c0_i32_1 = arith.constant 0 : i32
    return %arg0, %c0_i32, %c0_i32_0 : i32, i32, i32
  }
}

</mosaic_0001>

<bundles_post_ra>
// kernel: tpu_custom_call.1
= control target key start
LH: loop header
LB: loop body
LE: loop exit
PB: predicated region body
PF: predicated region fallthrough
CT: control target
= control target key end

     0   :  { %9 = vsyncpa [#allocation4], 0  ;;  %s2189_s0 = inlined_call_operand.hbm [shape: bf16[512,128], index: 0, kind: input, shape index: {}]   ;;  %s2190_s1 = inlined_call_operand.hbm [shape: bf16[128,128], index: 1, kind: input, shape index: {}]   ;;  %s2191_s2 = inlined_call_operand.hbm [shape: bf16[512,128], index: 2, kind: output, shape index: {0}]   ;;  %s2192_s3 = inlined_call_operand.hbm [shape: f32[2,8,128], index: 3, kind: output, shape index: {1}]  }
   0x1   :  { %11 = vsyncpa [#allocation4 + $0x1], 0 }
   0x2   :  { %12 = vsyncpa [#allocation7], 0 }
   0x3   :  { %13 = vsyncpa [#allocation5], 0 }
   0x4   :  { %15 = vsyncpa [#allocation5 + $0x1], 0 }
   0x5   :  { %16 = vsyncpa [#allocation10], 0 }
   0x6   :  { %18 = vsyncpa [#allocation10 + $0x1], 0  ;;  %s1796_s12 = smov 0   ;;  %s1798_s13 = smov 0  }
   0x7   :  { %s1800_s14 = smov 0   ;;  %s1802_s15 = smov 0  }
   0x8   :  { %s1804_s16 = smov 0   ;;  %s1806_s17 = smov 0  }
   0x9 LB: > { %s1191_s18 = sadd.s32 4294967295, %s1766_s17   ;;  %s1192_s19 = sadd.s32 4294967294, %s1766_s17   ;;  %s1766_s17 = sphi %s1806_s17, %s24_s17   ;;  %s1762_s16 = sphi %s1804_s16, %s2216_s16   ;;  %s1758_s15 = sphi %s1802_s15, %s2215_s15   ;;  %s1754_s14 = sphi %s1800_s14, %s2214_s14   ;;  %s1750_s13 = sphi %s1798_s13, %s2213_s13   ;;  %s1746_s12 = sphi %s1796_s12, %s2212_s12  }
   0xa   : > { %p58_p0 = scmp.ne.s32.totalorder %s1750_s13, %s1746_s12  ;;  %p1830_p1 = scmp.eq.s32.totalorder %s1191_s18, 0 }
   0xb   : > { %p1834_p2 = scmp.eq.s32.totalorder %s1191_s18, 1  ;;  %p109_p3 = scmp.eq.s32.totalorder %s1192_s19, 1 }
   0xc   : > { %s2197_s20 = scalar_select %p1830_p1, 1, 0 }
   0xd   : > { %s2198_s21 = scalar_select %p1834_p2, 1, 0 }
   0xe   : > { %p1840_p4 = por %p1830_p1, %p58_p0  ;;  %p1193_p5 = scmp.ge.s32.totalorder %s1766_s17, 1 }
   0xf   : > { %p1845_p6 = por %p109_p3, %p58_p0  ;;  %p142_p7 = scmp.lt.s32.totalorder %s1766_s17, 3 }
  0x10   : > { %s2199_s22 = scalar_select %p1840_p4, 1, 0 }
  0x11   : > { %s2200_s23 = scalar_select %p1845_p6, 1, 0 }
  0x12   : > { %p1850_p8 = pnand %p1193_p5, %p142_p7  ;;  %s1768_s25 = smov [#allocation6]  }
  0x13   : > { %s154_s26 = sshll.u32 %s1768_s25, 4  ;;  %s36_s28 = sadd.s32 1, %s1762_s16  ;;  %s155_s26 = int_to_ptr.vmem [resolvable:$true] %s154_s26 }
  0x14   : > { %s2201_s24 = scalar_select %p1850_p8, 1, 0 }
  0x15   : > { %p1494_p9 = pneg %p1850_p8  ;;  %s1590_s4 = scalar_lea.hbm %s2190_s1, 1024 }
  0x16   : > { %p1591_p12 = scmp.ne.s32.totalorder %s2190_s1, %s1590_s4  ;;  %p1597_p5 = scmp.lt.u32.totalorder %s1590_s4, %s2190_s1 }
  0x17   : > { %p1859_p11 = pnand %p1494_p9, %p1830_p1 }
  0x19   : > { %p1592_p13 = pneg %p1859_p11 }
  0x1b   : > { %p1593_p0 = pnand %p1592_p13, %p1591_p12 }
  0x1d   : > { %p1594_p3 = pneg %p1593_p0 }
  0x1f   : > { %p1599_p7 = pnand %p1597_p5, %p1594_p3 }
  0x21   : > { %1602 = shalt.err (!%p1599_p7)
}
  0x22   : > { %s1603_s9 = scalar_lea.vmem %s155_s26, 1024  ;;  %p1611_p1 = scmp.lt.s32.totalorder %s155_s26, %s155_s26 }
  0x23   : > { %p1604_p9 = scmp.ne.s32.totalorder %s155_s26, %s1603_s9  ;;  %p1612_p4 = scmp.lt.s32.totalorder %s1603_s9, %s1603_s9 }
  0x25   : > { %p1606_p10 = pnand %p1604_p9, %p1592_p13  ;;  %p1613_p8 = por %p1612_p4, %p1611_p1 }
  0x27   : > { %p1607_p6 = pneg %p1606_p10 }
  0x29   : > { %p1614_p2 = pnand %p1613_p8, %p1607_p6 }
  0x2b   : > { %1617 = shalt.err (!%p1614_p2)
}
  0x2c   : > { %s1769_s10 = smov 64   ;;  %s1770_s11 = smov 4  }
  0x2d   : > { %1497 = dma.hbm_to_vmem [thread:$0]  (!%p1859_p11), %s2190_s1, 1024, %s155_s26, [#allocation7], %s1769_s10, %s1769_s10, %s1770_s11  }
  0x2e   : > { %p38_p1 = scmp.ge.s32.totalorder %s36_s28, 2  ;;  %s45_s25 = sadd.s32 1, %s1754_s14 }
  0x2f   : > { %p52_p2 = scmp.ne.s32.totalorder %s1754_s14, %s1750_s13  ;;  %p53_p4 = scmp.eq.s32.totalorder %s1766_s17, 0 }
  0x30   : > { %s2218_s28 = smov (%p38_p1, %s36_s28), 0  ;;  %p2204_p8 = scmp.ne.s32.totalorder %s2198_s21, 0 }
  0x31   : > { %p1889_p6 = por %p53_p4, %p52_p2  ;;  %s40_s30 = ssub.s32 %s1762_s16, %s2218_s28 }
  0x32   : > { %p1895_p10 = por %p2204_p8, %p52_p2  ;;  %p1510_p12 = scmp.lt.s32.totalorder %s1766_s17, 2 }
  0x33   : > { %p43_p11 = scmp.eq.s32.totalorder %s40_s30, 0  ;;  %s168_s26 = sand.u32 1, %s1754_s14  }
  0x34   : > { %s1196_s4 = sshll.u32 %s168_s26, 7  ;;  %s1267_s6 = sshll.u32 %s1762_s16, 11 }
  0x35   : > { %s1904_s5 = scalar_select %p43_p11, %s1754_s14, %s45_s25  }
  0x36   : > { %s1910_s9 = scalar_lea.hbm %s2189_s0, %s1267_s6  ;;  %s172_s21 = scalar_lea.vmem [#allocation3], %s1196_s4 }
  0x37   : > { %s180_s18 = sshll.u32 %s172_s21, 4  ;;  %p1916_p13 = pnand %p1510_p12, %p1889_p6  ;;  %s1912_s18 = int_to_ptr.vmem [resolvable:$true] %s180_s18 }
  0x38   : > { %s1920_s25 = scalar_lea.sflag [#allocation4], %s168_s26  ;;  %s1618_s30 = scalar_lea.hbm %s1910_s9, 2048 }
  0x39   : > { %p1619_p0 = scmp.ne.s32.totalorder %s1910_s9, %s1618_s30  ;;  %p1620_p3 = pneg %p1916_p13 }
  0x3a   : > { %s1623_s29 = scalar_lea.hbm %s2189_s0, 4096  ;;  %p1624_p9 = scmp.lt.u32.totalorder %s1910_s9, %s2189_s0 }
  0x3b   : > { %p1621_p5 = pnand %p1620_p3, %p1619_p0  ;;  %p1625_p1 = scmp.lt.u32.totalorder %s1623_s29, %s1618_s30 }
  0x3c   : > { %p1627_p4 = scmp.lt.u32.totalorder %s1618_s30, %s1910_s9 }
  0x3d   : > { %p1622_p7 = pneg %p1621_p5  ;;  %p1626_p2 = por %p1625_p1, %p1624_p9 }
  0x3f   : > { %p1628_p6 = por %p1627_p4, %p1626_p2 }
  0x41   : > { %p1629_p8 = pnand %p1628_p6, %p1622_p7 }
  0x43   : > { %1632 = shalt.err (!%p1629_p8)
}
  0x44   : > { %s1633_s26 = scalar_lea.vmem %s1912_s18, 2048  ;;  %s1771_s21 = smov [#allocation3]  }
  0x45   : > { %p1634_p12 = scmp.ne.s32.totalorder %s1912_s18, %s1633_s26  ;;  %s1638_s4 = sshll.u32 %s1771_s21, 4  ;;  %s1639_s4 = int_to_ptr.vmem [resolvable:$false] %s1638_s4 }
  0x46   : > { %s1640_s6 = scalar_lea.vmem %s1639_s4, 4096  ;;  %p1641_p5 = scmp.lt.s32.totalorder %s1912_s18, %s1639_s4 }
  0x47   : > { %p1636_p11 = pnand %p1634_p12, %p1620_p3  ;;  %p1642_p9 = scmp.lt.s32.totalorder %s1640_s6, %s1633_s26 }
  0x49   : > { %p1637_p0 = pneg %p1636_p11  ;;  %p1643_p1 = por %p1642_p9, %p1641_p5 }
  0x4b   : > { %p1644_p2 = pnand %p1643_p1, %p1637_p0 }
  0x4d   : > { %1647 = shalt.err (!%p1644_p2)
}
  0x4e   : > { %1501 = dma.hbm_to_vmem [thread:$0]  (!%p1916_p13), %s1910_s9, 2048, %s1912_s18, %s1920_s25, %s1769_s10, %s1769_s10, %s1770_s11  }
  0x4f   : > { %p2207_p3 = scmp.ne.s32.totalorder %s2201_s24, 0 }
  0x50   : > { %s1954_s30 = sand.u32 (!%p2207_p3), 1, %s1750_s13   ;;  %p2208_p7 = scmp.ne.s32.totalorder (!%p2207_p3), %s2199_s22, 0 }
  0x51   : > { %192 = sbr.rel (%p2207_p3) target bundleno = 444 (0x1bc), region = 28  ;;  %s1200_s29 = sshll.u32 (!%p2207_p3), %s1954_s30, 7 }
  0x52   : > { %s195_s7 = scalar_lea.sflag (!%p2207_p3), [#allocation4], %s1954_s30  ;;  %s1960_s19 = scalar_lea.vmem (!%p2207_p3), [#allocation3], %s1200_s29 }
  0x58   : > { %1729 = dma.done.wait (%p2208_p7), %s195_s7, 2048  }
  0x59   : > { %1731 = vsyncadd (%p2208_p7), %s195_s7, 4294965248  ;;  %p2209_p13 = scmp.ne.s32.totalorder %s2197_s20, 0 }
  0x5b   : > { %1733 = dma.done.wait (%p2209_p13), [#allocation7], 1024  }
  0x5c   : > { %1735 = vsyncadd (%p2209_p13), [#allocation7], 4294966272  ;;  %v1566_v0 = vld [vmem:[#allocation6] sm:$0xff]   ;;  %v1567_v1 = vld [vmem:[#allocation6 + $0x8] sm:$0xff]   ;;  %s2000_s20 = scalar_lea.vmem [#allocation8], %s1200_s29  ;;  %s1300_s22 = sshll.u32 %s1758_s15, 11 }
  0x5d   : > { %1420 = vmatprep.subr.bf16.mxu0 %v1566_v0  ;;  %1468 = vmatprep.subr.bf16.mxu1 %v1566_v0  ;;  %v1568_v2 = vld [vmem:[#allocation6 + $0x10] sm:$0xff]   ;;  %v1569_v3 = vld [vmem:[#allocation6 + $0x18] sm:$0xff]   ;;  %v1574_v4 = vld [vmem:[%s1960_s19] sm:$0xff]   ;;  %s1051_s24 = sshll.u32 %s2000_s20, 4  ;;  %s2053_s9 = scalar_lea.hbm %s2191_s2, %s1300_s22  ;;  %s2055_s24 = int_to_ptr.vmem [resolvable:$true] %s1051_s24 }
  0x5e   : > { %1421 = vmatpush3.bf16.msra.mxu0 %v1566_v0  ;;  %1476 = vmatpush3.bf16.msra.mxu1 %v1566_v0  ;;  %v1570_v5 = vld [vmem:[#allocation6 + $0x20] sm:$0xff]   ;;  %v1571_v6 = vld [vmem:[#allocation6 + $0x28] sm:$0xff]   ;;  %v1572_v8 = vld [vmem:[#allocation6 + $0x30] sm:$0xff]   ;;  %s1033_s18 = scalar_lea.sflag [#allocation5], %s1954_s30  ;;  %s1648_s25 = scalar_lea.vmem %s2055_s24, 2048 }
  0x5f   : > { %1422 = vmatprep.subr.bf16.mxu0 %v1567_v1  ;;  %1469 = vmatprep.subr.bf16.mxu1 %v1567_v1  ;;  %v1582_v7 = vld [vmem:[%s1960_s19 + $0x40] sm:$0xff]   ;;  %v1573_v9 = vld [vmem:[#allocation6 + $0x38] sm:$0xff]   ;;  %v1575_v10 = vld [vmem:[%s1960_s19 + $0x8] sm:$0xff]   ;;  %p1649_p4 = scmp.ne.s32.totalorder %s2055_s24, %s1648_s25  ;;  %s1772_s8 = smov [#allocation8]  }
  0x60   : > { %1436 = vmatprep.mubr.bf16.mxu0 %v1574_v4  ;;  %1452 = vmatprep.mubr.bf16.mxu1 %v1582_v7  ;;  %v1583_v11 = vld [vmem:[%s1960_s19 + $0x48] sm:$0xff]   ;;  %v1576_v12 = vld [vmem:[%s1960_s19 + $0x10] sm:$0xff]   ;;  %v1577_v14 = vld [vmem:[%s1960_s19 + $0x18] sm:$0xff]   ;;  %s1652_s26 = sshll.u32 %s1772_s8, 4  ;;  %s1653_s26 = int_to_ptr.vmem [resolvable:$false] %s1652_s26 }
  0x61   : > { %v1584_v13 = vld [vmem:[%s1960_s19 + $0x50] sm:$0xff]   ;;  %v1585_v15 = vld [vmem:[%s1960_s19 + $0x58] sm:$0xff]   ;;  %v1578_v16 = vld [vmem:[%s1960_s19 + $0x20] sm:$0xff]   ;;  %p1650_p6 = pnand %p1649_p4, %p1895_p10  ;;  %s1654_s21 = scalar_lea.vmem %s1653_s26, 4096 }
  0x62   : > { %1423 = vmatpush3.bf16.msra.mxu0 %v1567_v1  ;;  %1477 = vmatpush3.bf16.msra.mxu1 %v1567_v1  ;;  %v1586_v17 = vld [vmem:[%s1960_s19 + $0x60] sm:$0xff]   ;;  %v1579_v18 = vld [vmem:[%s1960_s19 + $0x28] sm:$0xff]   ;;  %v1580_v20 = vld [vmem:[%s1960_s19 + $0x30] sm:$0xff]   ;;  %p1655_p12 = scmp.lt.s32.totalorder %s2055_s24, %s1653_s26  ;;  %p1656_p11 = scmp.lt.s32.totalorder %s1654_s21, %s1648_s25 }
  0x63   : > { %1424 = vmatprep.subr.bf16.mxu0 %v1568_v2  ;;  %1470 = vmatprep.subr.bf16.mxu1 %v1568_v2  ;;  %v1587_v19 = vld [vmem:[%s1960_s19 + $0x68] sm:$0xff]   ;;  %v1588_v21 = vld [vmem:[%s1960_s19 + $0x70] sm:$0xff]   ;;  %v1581_v22 = vld [vmem:[%s1960_s19 + $0x38] sm:$0xff]   ;;  %p1651_p8 = pneg %p1650_p6 }
  0x64   : > { %v1589_v23 = vld [vmem:[%s1960_s19 + $0x78] sm:$0xff]   ;;  %p1657_p0 = por %p1656_p11, %p1655_p12 }
  0x66   : > { %1425 = vmatpush3.bf16.msra.mxu0 %v1568_v2  ;;  %1478 = vmatpush3.bf16.msra.mxu1 %v1568_v2  ;;  %p1658_p5 = pnand %p1657_p0, %p1651_p8 }
  0x67   : > { %1426 = vmatprep.subr.bf16.mxu0 %v1569_v3  ;;  %1471 = vmatprep.subr.bf16.mxu1 %v1569_v3 }
  0x6a   : > { %1427 = vmatpush3.bf16.msra.mxu0 %v1569_v3  ;;  %1479 = vmatpush3.bf16.msra.mxu1 %v1569_v3 }
  0x6b   : > { %1428 = vmatprep.subr.bf16.mxu0 %v1570_v5  ;;  %1472 = vmatprep.subr.bf16.mxu1 %v1570_v5 }
  0x6e   : > { %1429 = vmatpush3.bf16.msra.mxu0 %v1570_v5  ;;  %1480 = vmatpush3.bf16.msra.mxu1 %v1570_v5 }
  0x6f   : > { %1430 = vmatprep.subr.bf16.mxu0 %v1571_v6  ;;  %1473 = vmatprep.subr.bf16.mxu1 %v1571_v6 }
  0x72   : > { %1431 = vmatpush3.bf16.msra.mxu0 %v1571_v6  ;;  %1481 = vmatpush3.bf16.msra.mxu1 %v1571_v6 }
  0x73   : > { %1432 = vmatprep.subr.bf16.mxu0 %v1572_v8  ;;  %1474 = vmatprep.subr.bf16.mxu1 %v1572_v8 }
  0x76   : > { %1433 = vmatpush3.bf16.msra.mxu0 %v1572_v8  ;;  %1482 = vmatpush3.bf16.msra.mxu1 %v1572_v8 }
  0x77   : > { %1434 = vmatprep.subr.bf16.mxu0 %v1573_v9  ;;  %1475 = vmatprep.subr.bf16.mxu1 %v1573_v9 }
  0x7a   : > { %1435 = vmatpush3.bf16.msra.mxu0 %v1573_v9  ;;  %1483 = vmatpush3.bf16.msra.mxu1 %v1573_v9 }
  0x7d   : > { %1437 = vmatmul.mubr.bf16.vlgmr.msra.gmra.mrb[0].mxu0 %v1575_v10  ;;  %1453 = vmatmul.mubr.bf16.vlgmr.msra.gmra.mrb[0].mxu1 %v1583_v11 }
  0x7e   : > { %1440 = vmatprep.mubr.bf16.mxu0 %v1576_v12  ;;  %1456 = vmatprep.mubr.bf16.mxu1 %v1584_v13 }
  0x85   : > { %1441 = vmatmul.mubr.bf16.gmra.mrb[4].mxu0 %v1577_v14  ;;  %1457 = vmatmul.mubr.bf16.gmra.mrb[4].mxu1 %v1585_v15 }
  0x86   : > { %1444 = vmatprep.mubr.bf16.mxu0 %v1578_v16  ;;  %1460 = vmatprep.mubr.bf16.mxu1 %v1586_v17 }
  0x8d   : > { %1445 = vmatmul.mubr.bf16.gmra.mrb[8].mxu0 %v1579_v18  ;;  %1461 = vmatmul.mubr.bf16.gmra.mrb[8].mxu1 %v1587_v19 }
  0x8e   : > { %1448 = vmatprep.mubr.bf16.mxu0 %v1580_v20  ;;  %1464 = vmatprep.mubr.bf16.mxu1 %v1588_v21 }
  0x95   : > { %1449 = vmatmul.mubr.bf16.gmra.mrb[12].mxu0 %v1581_v22  ;;  %1465 = vmatmul.mubr.bf16.gmra.mrb[12].mxu1 %v1589_v23 }
 0x150   : > { %v1438_v24 = vpop.f32.mrb[0].mxu0  ;;  %v1986_v25 = vpop.f32.mrb[0].mxu1 }
 0x151   : > { %v532_v26 = vpop.f32.mrb[1].mxu0  ;;  %v1988_v27 = vpop.f32.mrb[1].mxu1  ;;  %v957_v39 = vmul.f32 %v1438_v24, %v1438_v24 }
 0x152   : > { %v1439_v28 = vpop.f32.mrb[2].mxu0  ;;  %v1990_v29 = vpop.f32.mrb[2].mxu1  ;;  %v955_v30 = vmul.f32 %v532_v26, %v532_v26 }
 0x153   : > { %v1309_v31 = vpack.c.bf16 %v1439_v28, %v1438_v24  ;;  %v535_v32 = vpop.f32.mrb[3].mxu0  ;;  %v1349_v33 = vpack.c.bf16 %v1990_v29, %v1986_v25  ;;  %v1994_v34 = vpop.f32.mrb[3].mxu1  ;;  %v958_v42 = vmul.f32 %v1439_v28, %v1439_v28 }
 0x154   : > { %v1304_v35 = vpack.c.bf16 %v535_v32, %v532_v26  ;;  %v918_v36 = vadd.f32 %v535_v32, %v532_v26  ;;  %v956_v37 = vmul.f32 %v535_v32, %v535_v32  ;;  %v1344_v38 = vpack.c.bf16 %v1994_v34, %v1988_v27 }
 0x155   : > { %1381 = vst [vmem:[%s2000_s20 + $0x8] sm:$0xff] %v1309_v31   ;;  %1389 = vst [vmem:[%s2000_s20 + $0x48] sm:$0xff] %v1349_v33  }
 0x156   : > { %1305 = vst [vmem:[%s2000_s20] sm:$0xff] %v1304_v35   ;;  %v919_v40 = vadd.f32 %v1438_v24, %v918_v36  ;;  %v987_v41 = vadd.f32 %v956_v37, %v955_v30  ;;  %1388 = vst [vmem:[%s2000_s20 + $0x40] sm:$0xff] %v1344_v38  }
 0x158   : > { %v988_v43 = vadd.f32 %v987_v41, %v957_v39  ;;  %v1442_v44 = vpop.f32.mrb[4].mxu0  ;;  %v920_v45 = vadd.f32 %v1439_v28, %v919_v40  ;;  %v2006_v46 = vpop.f32.mrb[4].mxu1 }
 0x159   : > { %v548_v47 = vpop.f32.mrb[5].mxu0  ;;  %v2008_v48 = vpop.f32.mrb[5].mxu1  ;;  %v961_v63 = vmul.f32 %v1442_v44, %v1442_v44 }
 0x15a   : > { %v921_v49 = vadd.f32 %v920_v45, %v548_v47  ;;  %v959_v50 = vmul.f32 %v548_v47, %v548_v47  ;;  %v989_v51 = vadd.f32 %v988_v43, %v958_v42  ;;  %v1443_v52 = vpop.f32.mrb[6].mxu0  ;;  %v2010_v53 = vpop.f32.mrb[6].mxu1 }
 0x15b   : > { %v1319_v54 = vpack.c.bf16 %v1443_v52, %v1442_v44  ;;  %v551_v55 = vpop.f32.mrb[7].mxu0  ;;  %v1359_v56 = vpack.c.bf16 %v2010_v53, %v2006_v46  ;;  %v2014_v57 = vpop.f32.mrb[7].mxu1  ;;  %v962_v2 = vmul.f32 %v1443_v52, %v1443_v52 }
 0x15c   : > { %v990_v58 = vadd.f32 %v989_v51, %v959_v50  ;;  %v1314_v59 = vpack.c.bf16 %v551_v55, %v548_v47  ;;  %v922_v60 = vadd.f32 %v921_v49, %v551_v55  ;;  %v960_v61 = vmul.f32 %v551_v55, %v551_v55 }
 0x15d   : > { %1383 = vst [vmem:[%s2000_s20 + $0x18] sm:$0xff] %v1319_v54   ;;  %1391 = vst [vmem:[%s2000_s20 + $0x58] sm:$0xff] %v1359_v56   ;;  %v1354_v62 = vpack.c.bf16 %v2014_v57, %v2008_v48 }
 0x15e   : > { %1382 = vst [vmem:[%s2000_s20 + $0x10] sm:$0xff] %v1314_v59   ;;  %v923_v0 = vadd.f32 %v1442_v44, %v922_v60  ;;  %v991_v1 = vadd.f32 %v990_v58, %v960_v61  ;;  %v971_v61 = vmul.f32 %v1988_v27, %v1988_v27 }
 0x15f   : > { %1390 = vst [vmem:[%s2000_s20 + $0x50] sm:$0xff] %v1354_v62  }
 0x160   : > { %v992_v3 = vadd.f32 %v991_v1, %v961_v63  ;;  %v1446_v4 = vpop.f32.mrb[8].mxu0  ;;  %v924_v5 = vadd.f32 %v1443_v52, %v923_v0  ;;  %v2022_v6 = vpop.f32.mrb[8].mxu1 }
 0x161   : > { %v564_v7 = vpop.f32.mrb[9].mxu0  ;;  %v2024_v8 = vpop.f32.mrb[9].mxu1  ;;  %v965_v23 = vmul.f32 %v1446_v4, %v1446_v4 }
 0x162   : > { %v925_v9 = vadd.f32 %v924_v5, %v564_v7  ;;  %v963_v10 = vmul.f32 %v564_v7, %v564_v7  ;;  %v993_v11 = vadd.f32 %v992_v3, %v962_v2  ;;  %v1447_v12 = vpop.f32.mrb[10].mxu0  ;;  %v2026_v13 = vpop.f32.mrb[10].mxu1 }
 0x163   : > { %v1329_v14 = vpack.c.bf16 %v1447_v12, %v1446_v4  ;;  %v567_v15 = vpop.f32.mrb[11].mxu0  ;;  %v1369_v16 = vpack.c.bf16 %v2026_v13, %v2022_v6  ;;  %v2030_v17 = vpop.f32.mrb[11].mxu1  ;;  %v966_v28 = vmul.f32 %v1447_v12, %v1447_v12 }
 0x164   : > { %v994_v18 = vadd.f32 %v993_v11, %v963_v10  ;;  %v1324_v19 = vpack.c.bf16 %v567_v15, %v564_v7  ;;  %v926_v20 = vadd.f32 %v925_v9, %v567_v15  ;;  %v964_v21 = vmul.f32 %v567_v15, %v567_v15 }
 0x165   : > { %1385 = vst [vmem:[%s2000_s20 + $0x28] sm:$0xff] %v1329_v14   ;;  %1393 = vst [vmem:[%s2000_s20 + $0x68] sm:$0xff] %v1369_v16   ;;  %v1364_v22 = vpack.c.bf16 %v2030_v17, %v2024_v8 }
 0x166   : > { %1384 = vst [vmem:[%s2000_s20 + $0x20] sm:$0xff] %v1324_v19   ;;  %v927_v24 = vadd.f32 %v1446_v4, %v926_v20  ;;  %v995_v26 = vadd.f32 %v994_v18, %v964_v21 }
 0x167   : > { %1392 = vst [vmem:[%s2000_s20 + $0x60] sm:$0xff] %v1364_v22  }
 0x168   : > { %v996_v30 = vadd.f32 %v995_v26, %v965_v23  ;;  %v1450_v31 = vpop.f32.mrb[12].mxu0  ;;  %v928_v32 = vadd.f32 %v1447_v12, %v927_v24  ;;  %v2038_v33 = vpop.f32.mrb[12].mxu1 }
 0x169   : > { %v580_v35 = vpop.f32.mrb[13].mxu0  ;;  %v2040_v36 = vpop.f32.mrb[13].mxu1  ;;  %v969_v54 = vmul.f32 %v1450_v31, %v1450_v31 }
 0x16a   : > { %v929_v37 = vadd.f32 %v928_v32, %v580_v35  ;;  %v967_v38 = vmul.f32 %v580_v35, %v580_v35  ;;  %v997_v39 = vadd.f32 %v996_v30, %v966_v28  ;;  %v1451_v40 = vpop.f32.mrb[14].mxu0  ;;  %v2044_v41 = vpop.f32.mrb[14].mxu1 }
 0x16b   : > { %v1339_v42 = vpack.c.bf16 %v1451_v40, %v1450_v31  ;;  %v583_v43 = vpop.f32.mrb[15].mxu0  ;;  %v1379_v44 = vpack.c.bf16 %v2044_v41, %v2038_v33  ;;  %v2048_v45 = vpop.f32.mrb[15].mxu1  ;;  %v970_v58 = vmul.f32 %v1451_v40, %v1451_v40 }
 0x16c   : > { %v998_v47 = vadd.f32 %v997_v39, %v967_v38  ;;  %v1334_v49 = vpack.c.bf16 %v583_v43, %v580_v35  ;;  %v930_v50 = vadd.f32 %v929_v37, %v583_v43  ;;  %v968_v51 = vmul.f32 %v583_v43, %v583_v43 }
 0x16d   : > { %1387 = vst [vmem:[%s2000_s20 + $0x38] sm:$0xff] %v1339_v42   ;;  %1395 = vst [vmem:[%s2000_s20 + $0x78] sm:$0xff] %v1379_v44   ;;  %v1374_v52 = vpack.c.bf16 %v2048_v45, %v2040_v36 }
 0x16e   : > { %1386 = vst [vmem:[%s2000_s20 + $0x30] sm:$0xff] %v1334_v49   ;;  %v931_v55 = vadd.f32 %v1450_v31, %v930_v50  ;;  %v999_v56 = vadd.f32 %v998_v47, %v968_v51 }
 0x16f   : > { %1394 = vst [vmem:[%s2000_s20 + $0x70] sm:$0xff] %v1374_v52  }
 0x170   : > { %v1000_v59 = vadd.f32 %v999_v56, %v969_v54  ;;  %v932_v60 = vadd.f32 %v1451_v40, %v931_v55 }
 0x171   : > { %1661 = shalt.err (!%p1658_p5)
}
 0x172   : > { %s1662_s4 = scalar_lea.hbm %s2053_s9, 2048  ;;  %s1666_s7 = scalar_lea.hbm %s2191_s2, 4096 }
 0x173   : > { %p1663_p9 = scmp.ne.s32.totalorder %s2053_s9, %s1662_s4  ;;  %p1667_p3 = scmp.lt.u32.totalorder %s2053_s9, %s2191_s2 }
 0x174   : > { %p1668_p7 = scmp.lt.u32.totalorder %s1666_s7, %s1662_s4  ;;  %p1670_p4 = scmp.lt.u32.totalorder %s1662_s4, %s2053_s9 }
 0x175   : > { %p1664_p1 = pnand %p1663_p9, %p1895_p10 }
 0x176   : > { %p1669_p13 = por %p1668_p7, %p1667_p3 }
 0x177   : > { %p1665_p2 = pneg %p1664_p1 }
 0x178   : > { %p1671_p6 = por %p1670_p4, %p1669_p13 }
 0x17a   : > { %p1672_p8 = pnand %p1671_p6, %p1665_p2 }
 0x17c   : > { %1675 = shalt.err (!%p1672_p8)
}
 0x17d   : > { %s1773_s22 = smov 64   ;;  %s1774_s10 = smov 4   ;;  %v933_v62 = vadd.f32 %v932_v60, %v1988_v27  ;;  %v1001_v63 = vadd.f32 %v1000_v59, %v970_v58  ;;  %v972_v2 = vmul.f32 %v1994_v34, %v1994_v34  ;;  %v973_v3 = vmul.f32 %v1986_v25, %v1986_v25 }
 0x17e   : > { %1490 = dma.vmem_to_hbm [thread:$0]  (%p1895_p10), %s2055_s24, 2048, %s2053_s9, %s1033_s18, %s1773_s22, %s1773_s22, %s1774_s10   ;;  %v974_v7 = vmul.f32 %v1990_v29, %v1990_v29  ;;  %v975_v27 = vmul.f32 %v2008_v48, %v2008_v48  ;;  %v976_v15 = vmul.f32 %v2014_v57, %v2014_v57  ;;  %v980_v24 = vmul.f32 %v2030_v17, %v2030_v17 }
 0x17f   : > { %v1002_v0 = vadd.f32 %v1001_v63, %v971_v61  ;;  %v934_v1 = vadd.f32 %v933_v62, %v1994_v34  ;;  %v984_v38 = vmul.f32 %v2048_v45, %v2048_v45  ;;  %v1024_v50 = vlaneseq  ;;  %s1203_s24 = sshll.u32 %s1954_s30, 3  ;;  %s1264_s11 = sshll.u32 %s1758_s15, 7 }
 0x180   : > { %s229_s9 = scalar_lea.vmem [#allocation9], %s1203_s24  ;;  %s2140_s26 = scalar_lea.hbm %s2192_s3, %s1264_s11 }
 0x181   : > { %v935_v4 = vadd.f32 %v1986_v25, %v934_v1  ;;  %v1003_v5 = vadd.f32 %v1002_v0, %v972_v2  ;;  %v977_v25 = vmul.f32 %v2006_v46, %v2006_v46  ;;  %v1025_v55 = vshrl.u32 %v1024_v50, 7  ;;  %s1067_s18 = sshll.u32 %s229_s9, 4  ;;  %s1038_s21 = scalar_lea.sflag [#allocation10], %s1954_s30  ;;  %s2142_s18 = int_to_ptr.vmem [resolvable:$true] %s1067_s18 }
 0x182   : > { %s1676_s4 = scalar_lea.vmem %s2142_s18, 128  ;;  %s1775_s15 = smov [#allocation9]  }
 0x183   : > { %v1004_v9 = vadd.f32 %v1003_v5, %v973_v3  ;;  %v936_v10 = vadd.f32 %v1990_v29, %v935_v4  ;;  %v978_v29 = vmul.f32 %v2010_v53, %v2010_v53  ;;  %vm1026_vm0 = vcmp.eq.s32.totalorder %v1025_v55, 0  ;;  %p1677_p12 = scmp.ne.s32.totalorder %s2142_s18, %s1676_s4  ;;  %s1680_s6 = sshll.u32 %s1775_s15, 4  ;;  %s1681_s6 = int_to_ptr.vmem [resolvable:$false] %s1680_s6 }
 0x184   : > { %vm1028_vm1 = vcmp.eq.s32.totalorder %v1025_v55, 1  ;;  %s1682_s29 = scalar_lea.vmem %s1681_s6, 256  ;;  %p1683_p5 = scmp.lt.s32.totalorder %s2142_s18, %s1681_s6 }
 0x185   : > { %v937_v11 = vadd.f32 %v936_v10, %v2008_v48  ;;  %v1005_v12 = vadd.f32 %v1004_v9, %v974_v7  ;;  %v979_v48 = vmul.f32 %v2024_v8, %v2024_v8  ;;  %p1678_p11 = pnand %p1677_p12, %p1895_p10  ;;  %p1684_p9 = scmp.lt.s32.totalorder %s1682_s29, %s1676_s4 }
 0x187   : > { %v1006_v14 = vadd.f32 %v1005_v12, %v975_v27  ;;  %v938_v34 = vadd.f32 %v937_v11, %v2014_v57  ;;  %p1679_p0 = pneg %p1678_p11  ;;  %p1685_p1 = por %p1684_p9, %p1683_p5 }
 0x189   : > { %v939_v16 = vadd.f32 %v2006_v46, %v938_v34  ;;  %v1007_v18 = vadd.f32 %v1006_v14, %v976_v15  ;;  %v981_v46 = vmul.f32 %v2022_v6, %v2022_v6  ;;  %p1686_p2 = pnand %p1685_p1, %p1679_p0 }
 0x18b   : > { %v1008_v19 = vadd.f32 %v1007_v18, %v977_v25  ;;  %v940_v20 = vadd.f32 %v2010_v53, %v939_v16  ;;  %v982_v53 = vmul.f32 %v2026_v13, %v2026_v13 }
 0x18d   : > { %v941_v21 = vadd.f32 %v940_v20, %v2024_v8  ;;  %v1009_v22 = vadd.f32 %v1008_v19, %v978_v29  ;;  %v983_v8 = vmul.f32 %v2040_v36, %v2040_v36 }
 0x18f   : > { %v1010_v23 = vadd.f32 %v1009_v22, %v979_v48  ;;  %v942_v57 = vadd.f32 %v941_v21, %v2030_v17 }
 0x191   : > { %v943_v26 = vadd.f32 %v2022_v6, %v942_v57  ;;  %v1011_v28 = vadd.f32 %v1010_v23, %v980_v24  ;;  %v985_v6 = vmul.f32 %v2038_v33, %v2038_v33 }
 0x193   : > { %v1012_v30 = vadd.f32 %v1011_v28, %v981_v46  ;;  %v944_v31 = vadd.f32 %v2026_v13, %v943_v26  ;;  %v986_v13 = vmul.f32 %v2044_v41, %v2044_v41 }
 0x195   : > { %v945_v32 = vadd.f32 %v944_v31, %v2040_v36  ;;  %v1013_v35 = vadd.f32 %v1012_v30, %v982_v53 }
 0x197   : > { %v1014_v37 = vadd.f32 %v1013_v35, %v983_v8  ;;  %v946_v17 = vadd.f32 %v945_v32, %v2048_v45 }
 0x199   : > { %v947_v39 = vadd.f32 %v2038_v33, %v946_v17  ;;  %v1015_v40 = vadd.f32 %v1014_v37, %v984_v38 }
 0x19b   : > { %v948_v42 = vadd.f32 %v2044_v41, %v947_v39  ;;  %v1016_v36 = vadd.f32 %v1015_v40, %v985_v6 }
 0x19d   : > { %v949_v43 = vrot.slane %v948_v42, 4  ;;  %v1017_v44 = vadd.f32 %v1016_v36, %v986_v13 }
 0x19f   : > { %v950_v47 = vadd.f32 %v949_v43, %v948_v42  ;;  %v1018_v49 = vrot.slane %v1017_v44, 4 }
 0x1a1   : > { %v951_v45 = vrot.slane %v950_v47, 2  ;;  %v1019_v51 = vadd.f32 %v1018_v49, %v1017_v44 }
 0x1a3   : > { %v952_v52 = vadd.f32 %v951_v45, %v950_v47  ;;  %v1020_v54 = vrot.slane %v1019_v51, 2 }
 0x1a5   : > { %v953_v33 = vrot.slane %v952_v52, 1  ;;  %v1021_v56 = vadd.f32 %v1020_v54, %v1019_v51 }
 0x1a7   : > { %v954_v58 = vadd.f32 %v953_v33, %v952_v52  ;;  %v1022_v59 = vrot.slane %v1021_v56, 1 }
 0x1a9   : > { %v1023_v41 = vadd.f32 %v1022_v59, %v1021_v56  ;;  %v1027_v60 = vsel %vm1026_vm0, %v954_v58, 0.0 }
 0x1ab   : > { %v1029_v61 = vsel %vm1028_vm1, %v1023_v41, 0.0 }
 0x1ac   : > { %v1030_v62 = vadd.f32 %v1029_v61, %v1027_v60 }
 0x1ae   : > { %1031 = vst [vmem:[%s229_s9] sm:$0xff] %v1030_v62 }
 0x1af   : > { %1689 = shalt.err (!%p1686_p2)
}
 0x1b0   : > { %s1690_s30 = scalar_lea.hbm %s2140_s26, 128  ;;  %s1694_s20 = scalar_lea.hbm %s2192_s3, 256 }
 0x1b1   : > { %p1691_p3 = scmp.ne.s32.totalorder %s2140_s26, %s1690_s30  ;;  %p1695_p4 = scmp.lt.u32.totalorder %s2140_s26, %s2192_s3 }
 0x1b2   : > { %p1696_p6 = scmp.lt.u32.totalorder %s1694_s20, %s1690_s30  ;;  %p1698_p12 = scmp.lt.u32.totalorder %s1690_s30, %s2140_s26 }
 0x1b3   : > { %p1692_p7 = pnand %p1691_p3, %p1895_p10 }
 0x1b4   : > { %p1697_p8 = por %p1696_p6, %p1695_p4 }
 0x1b5   : > { %p1693_p13 = pneg %p1692_p7 }
 0x1b6   : > { %p1699_p11 = por %p1698_p12, %p1697_p8 }
 0x1b8   : > { %p1700_p0 = pnand %p1699_p11, %p1693_p13 }
 0x1ba   : > { %1703 = shalt.err (!%p1700_p0)
}
 0x1bb   : > { %1491 = dma.vmem_to_hbm [thread:$0]  (%p1895_p10), %s2142_s18, 128, %s2140_s26, %s1038_s21  }
 0x1bc PF: > { %s1079_s24 = sand.u32 1, %s1746_s12   ;;  %p2210_p5 = scmp.ne.s32.totalorder %s2200_s23, 0 }
 0x1bd   : > { %p2211_p9 = scmp.ge.s32.totalorder %s1766_s17, 2  ;;  %s1080_s11 = scalar_lea.sflag [#allocation5], %s1079_s24 }
 0x1bf   : > { %p1503_p1 = pnand %p2211_p9, %p2210_p5 }
 0x1c1   : > { %1737 = dma.done.wait (!%p1503_p1), %s1080_s11, 2048  }
 0x1c2   : > { %1739 = vsyncadd (!%p1503_p1), %s1080_s11, 4294965248  ;;  %s1089_s9 = scalar_lea.sflag [#allocation10], %s1079_s24 }
 0x1c3   : > { %1741 = dma.done.wait (!%p1503_p1), %s1089_s9, 128  }
 0x1c4   : > { %1743 = vsyncadd (!%p1503_p1), %s1089_s9, 4294967168  ;;  %s24_s17 = sadd.s32 1, %s1766_s17   ;;  %s2212_s12 = smov %s1750_s13 }
 0x1c5   : > { %p21_p2 = scmp.ge.s32.totalorder %s24_s17, 4   ;;  %s2213_s13 = smov %s1754_s14 }
 0x1c6   : > { %s2214_s14 = smov %s1904_s5  ;;  %s2215_s15 = smov %s1762_s16 }
 0x1c7   : > { %s2216_s16 = smov %s2218_s28  ;;  %23 = sbr.rel (!%p21_p2) target bundleno = 9 (0x9), region = 103 }
 0x1ce   :  { %1094 = vsyncpa [#allocation4], 1 }
 0x1cf   :  { %1096 = vsyncpa [#allocation4 + $0x1], 1 }
 0x1d0   :  { %1097 = vsyncpa [#allocation7], 1 }
 0x1d1   :  { %1098 = vsyncpa [#allocation5], 1 }
 0x1d2   :  { %1100 = vsyncpa [#allocation5 + $0x1], 1 }
 0x1d3   :  { %1101 = vsyncpa [#allocation10], 1 }
 0x1d4   :  { %1103 = vsyncpa [#allocation10 + $0x1], 1 }

</bundles_post_ra>
